<compile_context>
chip_gen: v5e
topology: v5e:2x2
jax: 0.10.0
libtpu: 0.0.40
codegen_flags: <defaults>
</compile_context>

<pallas_src>
import functools

import jax
import jax.numpy as jnp
from jax.experimental import pallas as pl
from jax.experimental.pallas import tpu as pltpu

# ---------------------------------------------------------------------------
# Small, TPU-tile-friendly sizes.
B = 2        # batch
SX = 16      # source sequence length (encoder side)
SY = 8       # target sequence length (decoder side)
D = 32       # hidden size (decoder.n_dim)
V = 128      # vocab size  (decoder.n_vocab)
NTYPE = 2    # token-type vocabulary
N = B * SY   # batch folded into rows for the fusion kernel


# ---------------------------------------------------------------------------
# Pallas kernel: pointer-generator fusion head (single invocation, no grid).
#
#   p_gen  = sigmoid(cls@wc + q@wq + s@ws + (bc+bq+bs))          -- VPU + lane-reduce
#   output = p_gen*((q+s)@Wo) + (1-p_gen)*(mean@Wbc + q@Wqc + bbc+bqc)
#          = [(1-p)*mean, (1-p)*q, p*(q+s)] @ [Wbc;Wqc;Wo] + (1-p)*(bbc+bqc)
#
# Shapes inside the kernel:
#   q, s, cls_b, mean_b : (N, D)     f32
#   wg                  : (3, D)     f32   rows = [cls, q, s] gate weights
#   bg                  : (1,)       f32   SMEM scalar (bc+bq+bs)
#   wctx                : (3D, V)    bf16  [Wbc; Wqc; Wo]
#   bctx                : (1, V)     f32   bbc + bqc
#   o                   : (N, V)     f32
def pointer_fusion_kernel(q_ref, s_ref, cls_ref, mean_ref,
                          wg_ref, bg_ref, wctx_ref, bctx_ref, o_ref):
    q = q_ref[...]
    s = s_ref[...]
    cls_b = cls_ref[...]
    mean_b = mean_ref[...]

    # Pointer gate on VPU (multiplies) + XLU (lane reduce) — no 1-lane MXU pushes.
    gate = (cls_b * wg_ref[0:1, :] + q * wg_ref[1:2, :] + s * wg_ref[2:3, :])
    p_gen = jax.nn.sigmoid(jnp.sum(gate, axis=-1, keepdims=True) + bg_ref[0])   # (N, 1)
    one_minus = 1.0 - p_gen

    # One fused MXU contraction (K = 3D).  Gate-weighting is applied to the LHS
    # in f32 on the VPU, then cast to bf16 for the MXU; accumulate in f32.
    lhs = jnp.concatenate(
        [one_minus * mean_b, one_minus * q, p_gen * (q + s)], axis=-1)           # (N, 3D)
    mixed = jnp.dot(lhs.astype(jnp.bfloat16), wctx_ref[...],
                    preferred_element_type=jnp.float32)                          # (N, V)
    o_ref[...] = mixed + one_minus * bctx_ref[...]


def pointer_fusion(cls_output, q_t, s_t, mean_all, head, wo):
    """cls_output: [B,D]; q_t/s_t: [B,SY,D]; mean_all: [B,1,D]; wo: [D,V] -> [B,SY,V]."""
    (wc, bc, wq, bq, ws, bs, wbc, bbc, wqc, bqc) = head

    # Fold batch into rows; broadcast per-batch CLS / mean over the SY positions.
    q2 = q_t.reshape(N, D)
    s2 = s_t.reshape(N, D)
    cls_b = jnp.broadcast_to(cls_output[:, None, :], (B, SY, D)).reshape(N, D)
    mean_b = jnp.broadcast_to(mean_all, (B, SY, D)).reshape(N, D)

    # Pack gate weights/biases and context/vocab projections.
    w_gate = jnp.concatenate([wc.T, wq.T, ws.T], axis=0)                  # (3, D)
    b_gate = (bc + bq + bs).reshape(1)                                    # (1,)   scalar
    w_ctx = jnp.concatenate([wbc, wqc, wo], axis=0).astype(jnp.bfloat16)  # (3D, V)
    b_ctx = bbc + bqc                                                     # (1, V)

    vmem = pl.BlockSpec(memory_space=pltpu.MemorySpace.VMEM)
    smem = pl.BlockSpec(memory_space=pltpu.MemorySpace.SMEM)

    out = pl.pallas_call(
        pointer_fusion_kernel,
        out_shape=jax.ShapeDtypeStruct((N, V), jnp.float32),
        in_specs=[vmem, vmem, vmem, vmem,     # q, s, cls_b, mean_b
                  vmem, smem,                 # packed gate W, gate bias scalar
                  vmem, vmem],                # packed (3D,V) weights, summed bias
        out_specs=vmem,
    )(q2, s2, cls_b, mean_b, w_gate, b_gate, w_ctx, b_ctx)
    return out.reshape(B, SY, V)


# ---------------------------------------------------------------------------
# Deterministic parameter init (synthetic weights; shapes follow __init__).
def init_params(key):
    ks = list(jax.random.split(key, 24))
    nk = lambda: ks.pop()
    lin = lambda din, dout: (jax.random.normal(nk(), (din, dout), jnp.float32) * 0.05,
                             jnp.zeros((1, dout), jnp.float32))

    head = []
    for dout in (1, 1, 1, V, V):   # cls_to_sig, q_t_to_sig, s_t_to_sig, bert_to_context, q_t_to_context
        w, b = lin(D, dout)
        head.extend([w, b])

    enc = dict(
        word=jax.random.normal(nk(), (V, D), jnp.float32) * 0.05,
        type=jax.random.normal(nk(), (NTYPE, D), jnp.float32) * 0.05,
        pos=jax.random.normal(nk(), (max(SX, SY), D), jnp.float32) * 0.05,
        w=jax.random.normal(nk(), (D, D), jnp.float32) * 0.05,
    )
    dec = dict(
        word=enc["word"], type=enc["type"], pos=enc["pos"],   # decoder shares BERT embeddings
        wq=jax.random.normal(nk(), (D, D), jnp.float32) * 0.05,
        wk=jax.random.normal(nk(), (D, D), jnp.float32) * 0.05,
        wv=jax.random.normal(nk(), (D, D), jnp.float32) * 0.05,
        wo=jax.random.normal(nk(), (D, V), jnp.float32) * 0.05,
    )
    return dict(head=tuple(head), enc=enc, dec=dec)


# ---------------------------------------------------------------------------
# Encoder / Decoder stubs (external classes, not defined in the given module).
# TODO(synk): real Encoder wraps an external HuggingFace BertModel and Decoder is a
# transformer stack; stubbed here with deterministic embeddings + attention so the
# Pallas pointer head receives inputs of the exact required shapes.
def encoder_stub(x_ids, x_tok, x_mask, enc):
    emb = enc["word"][x_ids] + enc["type"][x_tok] + enc["pos"][None, : x_ids.shape[1], :]
    all_output = jnp.tanh(emb @ enc["w"]) * x_mask[..., None]       # [B, SX, D]
    cls_output = all_output[:, 0, :]                                # [B, D]
    return all_output, cls_output


def decoder_stub(y_ids, y_tok, enc_out, src_mask, trg_mask, dec):
    emb = dec["word"][y_ids] + dec["type"][y_tok] + dec["pos"][None, : y_ids.shape[1], :]
    # masked (causal * padding) self-attention -> q_t
    qs, ksq, vs = emb @ dec["wq"], emb @ dec["wk"], emb @ dec["wv"]
    att = jnp.einsum("bqd,bkd->bqk", qs, ksq) / jnp.sqrt(float(D))
    att = jnp.where(trg_mask[:, 0] > 0, att, -1e20)
    q_t = jax.nn.softmax(att, axis=-1) @ vs                         # [B, SY, D]
    # source-masked cross-attention over encoder outputs -> s_t
    catt = jnp.einsum("bqd,bkd->bqk", q_t, enc_out) / jnp.sqrt(float(D))
    catt = jnp.where(src_mask[:, 0] > 0, catt, -1e20)
    s_t = jax.nn.softmax(catt, axis=-1) @ enc_out                   # [B, SY, D]
    # NOTE: the decoder's vocab projection out = (q_t + s_t) @ wo is fused into
    # the Pallas pointer kernel to avoid the [B,SY,V] HBM round-trip.
    return s_t, q_t


# ---------------------------------------------------------------------------
# Full forward (pointer=True branch of PointerBertSumAbs.forward).
@functools.partial(jax.jit, static_argnames=("in_origin",))
def forward(params, x_input_ids, x_token_type_ids, x_attention_mask,
            y_input_ids, y_token_type_ids, y_attention_mask, in_origin=False):
    # Truncate to 512 (no-op at these sizes, kept for fidelity).
    x_input_ids = x_input_ids[:, :512]
    x_token_type_ids = x_token_type_ids[:, :512]
    x_attention_mask = x_attention_mask[:, :512]
    y_input_ids = y_input_ids[:, :512]
    y_token_type_ids = y_token_type_ids[:, :512]
    y_attention_mask = y_attention_mask[:, :512]

    batch_size, num_words = y_input_ids.shape

    # make_block_mask: causal lower-triangular mask, expanded over batch.
    y_block_mask = jnp.broadcast_to(
        jnp.tril(jnp.ones((num_words, num_words), jnp.float32))[None, None],
        (batch_size, 1, num_words, num_words))
    y_padding_mask = jnp.broadcast_to(
        y_attention_mask.astype(jnp.float32)[:, None, None, :],
        (batch_size, 1, num_words, num_words))
    trg_mask = y_padding_mask * y_block_mask                        # [B,1,SY,SY]

    all_output, cls_output = encoder_stub(
        x_input_ids, x_token_type_ids, x_attention_mask.astype(jnp.float32), params["enc"])
    src_mask = x_attention_mask.astype(jnp.float32)[:, None, None, :]   # [B,1,1,SX]

    s_t, q_t = decoder_stub(
        y_input_ids, y_token_type_ids, all_output, src_mask, trg_mask, params["dec"])

    mean_all = jnp.mean(all_output, axis=1, keepdims=True)          # [B,1,D]

    # --- Pallas hot path: pointer-generator fusion (+ fused decoder vocab proj) ---
    output = pointer_fusion(cls_output, q_t, s_t, mean_all,
                            params["head"], params["dec"]["wo"])

    if in_origin:
        # output[i,:,v] kept only for v present in x_input_ids[i]; v==0 and v==101
        # forced to -1e20 (equivalent to the gather/scatter loop in the reference).
        vocab = jnp.arange(V)
        allowed = jnp.any(x_input_ids[:, :, None] == vocab[None, None, :], axis=1)
        allowed = allowed & (vocab != 101) & (vocab != 0)
        output = jnp.where(allowed[:, None, :], output, jnp.float32(-1e20))
    return output


# ---------------------------------------------------------------------------
if __name__ == "__main__":
    key = jax.random.PRNGKey(0)
    k_par, k_x, k_y = jax.random.split(key, 3)
    params = init_params(k_par)

    x_input_ids = jax.random.randint(k_x, (B, SX), 0, V, dtype=jnp.int32)
    x_token_type_ids = jnp.zeros((B, SX), jnp.int32)
    x_attention_mask = (jnp.arange(SX)[None, :] < jnp.array([[SX], [SX - 4]])).astype(jnp.int32)

    y_input_ids = jax.random.randint(k_y, (B, SY), 0, V, dtype=jnp.int32)
    y_token_type_ids = jnp.zeros((B, SY), jnp.int32)
    y_attention_mask = (jnp.arange(SY)[None, :] < jnp.array([[SY], [SY - 2]])).astype(jnp.int32)

    output = forward(params, x_input_ids, x_token_type_ids, x_attention_mask,
                     y_input_ids, y_token_type_ids, y_attention_mask, in_origin=False)
    jax.block_until_ready(output)
    assert output.shape == (B, SY, V) and output.dtype == jnp.float32
    print("KERNEL_OK")
</pallas_src>

<mosaic_0001>
module attributes {stable_mosaic.version = 11 : i64} {
  func.func @pointer_fusion_kernel(%arg0: memref<16x32xf32, #tpu.memory_space<vmem>>, %arg1: memref<16x32xf32, #tpu.memory_space<vmem>>, %arg2: memref<16x32xf32, #tpu.memory_space<vmem>>, %arg3: memref<16x32xf32, #tpu.memory_space<vmem>>, %arg4: memref<3x32xf32, #tpu.memory_space<vmem>>, %arg5: memref<1xf32, #tpu.memory_space<smem>>, %arg6: memref<96x128xbf16, #tpu.memory_space<vmem>>, %arg7: memref<1x128xf32, #tpu.memory_space<vmem>>, %arg8: memref<16x128xf32, #tpu.memory_space<vmem>>) attributes {dimension_semantics = [], scalar_prefetch = 0 : i64, scratch_operands = 0 : i64, tpu.core_type = #tpu.core_type<tc>} {
    %c0 = arith.constant 0 : index
    %c0_0 = arith.constant 0 : index
    %0 = vector.load %arg0[%c0, %c0_0] : memref<16x32xf32, #tpu.memory_space<vmem>>, vector<16x32xf32>
    %c0_1 = arith.constant 0 : index
    %c0_2 = arith.constant 0 : index
    %1 = vector.load %arg1[%c0_1, %c0_2] : memref<16x32xf32, #tpu.memory_space<vmem>>, vector<16x32xf32>
    %c0_3 = arith.constant 0 : index
    %c0_4 = arith.constant 0 : index
    %2 = vector.load %arg2[%c0_3, %c0_4] : memref<16x32xf32, #tpu.memory_space<vmem>>, vector<16x32xf32>
    %c0_5 = arith.constant 0 : index
    %c0_6 = arith.constant 0 : index
    %3 = vector.load %arg3[%c0_5, %c0_6] : memref<16x32xf32, #tpu.memory_space<vmem>>, vector<16x32xf32>
    %c0_7 = arith.constant 0 : index
    %c0_8 = arith.constant 0 : index
    %4 = vector.load %arg4[%c0_7, %c0_8] : memref<3x32xf32, #tpu.memory_space<vmem>>, vector<1x32xf32>
    %5 = vector.broadcast %4 : vector<1x32xf32> to vector<16x32xf32>
    %6 = arith.mulf %2, %5 : vector<16x32xf32>
    %c1 = arith.constant 1 : index
    %c0_9 = arith.constant 0 : index
    %7 = vector.load %arg4[%c1, %c0_9] : memref<3x32xf32, #tpu.memory_space<vmem>>, vector<1x32xf32>
    %8 = vector.broadcast %7 : vector<1x32xf32> to vector<16x32xf32>
    %9 = arith.mulf %0, %8 : vector<16x32xf32>
    %10 = arith.addf %6, %9 : vector<16x32xf32>
    %c2 = arith.constant 2 : index
    %c0_10 = arith.constant 0 : index
    %11 = vector.load %arg4[%c2, %c0_10] : memref<3x32xf32, #tpu.memory_space<vmem>>, vector<1x32xf32>
    %12 = vector.broadcast %11 : vector<1x32xf32> to vector<16x32xf32>
    %13 = arith.mulf %1, %12 : vector<16x32xf32>
    %14 = arith.addf %10, %13 : vector<16x32xf32>
    %cst = arith.constant dense<0.000000e+00> : vector<16xf32>
    %15 = vector.multi_reduction <add>, %14, %cst [1] : vector<16x32xf32> to vector<16xf32>
    %16 = vector.shape_cast %15 : vector<16xf32> to vector<16x1xf32>
    %c0_11 = arith.constant 0 : index
    %17 = memref.load %arg5[%c0_11] : memref<1xf32, #tpu.memory_space<smem>>
    %18 = vector.broadcast %17 : f32 to vector<16x1xf32>
    %19 = arith.addf %16, %18 : vector<16x1xf32>
    %20 = arith.negf %19 : vector<16x1xf32>
    %21 = math.exp %20 : vector<16x1xf32>
    %cst_12 = arith.constant 1.000000e+00 : f32
    %22 = vector.broadcast %cst_12 : f32 to vector<16x1xf32>
    %23 = arith.addf %22, %21 : vector<16x1xf32>
    %24 = arith.divf %22, %23 : vector<16x1xf32>
    %cst_13 = arith.constant 1.000000e+00 : f32
    %25 = vector.broadcast %cst_13 : f32 to vector<16x1xf32>
    %26 = arith.subf %25, %24 : vector<16x1xf32>
    %27 = vector.broadcast %26 : vector<16x1xf32> to vector<16x32xf32>
    %28 = arith.mulf %27, %3 : vector<16x32xf32>
    %29 = vector.broadcast %26 : vector<16x1xf32> to vector<16x32xf32>
    %30 = arith.mulf %29, %0 : vector<16x32xf32>
    %31 = arith.addf %0, %1 : vector<16x32xf32>
    %32 = vector.broadcast %24 : vector<16x1xf32> to vector<16x32xf32>
    %33 = arith.mulf %32, %31 : vector<16x32xf32>
    %34 = tpu.concatenate %28, %30, %33 in 1 : vector<16x32xf32>, vector<16x32xf32>, vector<16x32xf32> -> vector<16x96xf32>
    %35 = arith.truncf %34 : vector<16x96xf32> to vector<16x96xbf16>
    %c0_14 = arith.constant 0 : index
    %c0_15 = arith.constant 0 : index
    %36 = vector.load %arg6[%c0_14, %c0_15] : memref<96x128xbf16, #tpu.memory_space<vmem>>, vector<96x128xbf16>
    %cst_16 = arith.constant dense<0.000000e+00> : vector<16x128xf32>
    %37 = tpu.matmul %35, %36, %cst_16 {dimension_numbers = #tpu.dot_dimension_numbers<[1], [0], [0], [1], [0, 0, 1, 1], [], []>} : vector<16x96xbf16>, vector<96x128xbf16>, vector<16x128xf32> -> vector<16x128xf32>
    %c0_17 = arith.constant 0 : index
    %c0_18 = arith.constant 0 : index
    %38 = vector.load %arg7[%c0_17, %c0_18] : memref<1x128xf32, #tpu.memory_space<vmem>>, vector<1x128xf32>
    %39 = vector.broadcast %26 : vector<16x1xf32> to vector<16x128xf32>
    %40 = vector.broadcast %38 : vector<1x128xf32> to vector<16x128xf32>
    %41 = arith.mulf %39, %40 : vector<16x128xf32>
    %42 = arith.addf %37, %41 : vector<16x128xf32>
    %c0_19 = arith.constant 0 : index
    %c0_20 = arith.constant 0 : index
    %43 = vector.load %arg8[%c0_19, %c0_20] : memref<16x128xf32, #tpu.memory_space<vmem>>, vector<16x128xf32>
    tpu.vector_store %arg8[%c0_19, %c0_20], %42 {strides = array<i32>} : memref<16x128xf32, #tpu.memory_space<vmem>>, vector<16x128xf32>,
    return
  }
}

</mosaic_0001>

<bundles_post_ra>
// kernel: forward.1
= control target key start
LH: loop header
LB: loop body
LE: loop exit
PB: predicated region body
PF: predicated region fallthrough
CT: control target
= control target key end

     0   :  { %s443_s0 = inlined_call_operand.vmem [shape: f32[16,32], index: 0, kind: input, shape index: {}]   ;;  %s444_s1 = inlined_call_operand.vmem [shape: f32[16,32], index: 1, kind: input, shape index: {}]   ;;  %s445_s2 = inlined_call_operand.vmem [shape: f32[16,32], index: 2, kind: input, shape index: {}]   ;;  %s446_s3 = inlined_call_operand.vmem [shape: f32[16,32], index: 3, kind: input, shape index: {}]   ;;  %s447_s4 = inlined_call_operand.vmem [shape: f32[3,32], index: 4, kind: input, shape index: {}]   ;;  %s448_s5 = inlined_call_operand.<no memory space> [shape: f32[1], index: 5, kind: input, shape index: {}]   ;;  %s449_s6 = inlined_call_operand.vmem [shape: bf16[96,128], index: 6, kind: input, shape index: {}]   ;;  %s450_s7 = inlined_call_operand.vmem [shape: f32[1,128], index: 7, kind: input, shape index: {}]   ;;  %s451_s8 = inlined_call_operand.hbm [shape: f32[16,128], index: 8, kind: output, shape index: {}]  }
   0x1   :  { %v368_v0 = vld [vmem:[%s443_s0] sm:$0xff]  ;;  %v390_v7 = vld [vmem:[%s443_s0 + $0x8] sm:$0xff] }
   0x2   :  { %v373_v1 = vld [vmem:[%s444_s1] sm:$0xff]  ;;  %v37_v8 = vld [vmem:[%s445_s2 + $0x8] sm:$0xff] }
   0x3   :  { %v36_v2 = vld [vmem:[%s445_s2] sm:$0xff] }
   0x4   :  { %v277_v3 = vld [vmem:[%s447_s4] ss:$0 sm:$0xff]  ;;  %v278_v4 = vld [vmem:[%s447_s4 + $0x1] ss:$0 sm:$0xff]  ;;  %v279_v5 = vld [vmem:[%s447_s4 + $0x2] ss:$0 sm:$0xff] }
   0x5   :  { %v42_v6 = vmul.f32 %v277_v3, %v36_v2  ;;  %v46_v9 = vmul.f32 %v278_v4, %v368_v0  ;;  %v52_v10 = vmul.f32 %v279_v5, %v373_v1  ;;  %v43_v11 = vmul.f32 %v277_v3, %v37_v8 }
   0x6   :  { %v47_v12 = vmul.f32 %v278_v4, %v390_v7 }
   0x7   :  { %14 = vsyncpa [#allocation4], 0  ;;  %v35_v13 = vld [vmem:[%s444_s1 + $0x8] sm:$0xff]  ;;  %v48_v14 = vadd.f32 %v46_v9, %v42_v6  ;;  %vm56_vm0 = vcmask 261120   ;;  %v64_v21 = vstv %s448_s5  ;;  %v260_v36 = vld [vmem:[%s449_s6 + $0x20] sm:$0xff]  ;;  %v111_v51 = vadd.f32 %v373_v1, %v368_v0  ;;  %s315_s26 = smov 32  }
   0x8   :  { %v49_v16 = vadd.f32 %v47_v12, %v43_v11  ;;  %v53_v17 = vmul.f32 %v279_v5, %v35_v13  ;;  %v261_v34 = vld [vmem:[%s449_s6 + $0x28] sm:$0xff]  ;;  %v259_v39 = vld [vmem:[%s449_s6 + $0x18] sm:$0xff]  ;;  %v112_v52 = vadd.f32 %v35_v13, %v390_v7  ;;  %s316_s27 = smov 64   ;;  %v258_v1 = vld [vmem:[%s449_s6 + $0x10] sm:$0xff]  ;;  %vm133_vm9 = vcmask 523264   ;;  %s217_s20 = sshll.u32 %s451_s8, 4  ;;  %s218_s20 = int_to_ptr.hbm [resolvable:$true] %s217_s20 }
   0x9   :  { %v54_v15 = vadd.f32 %v52_v10, %v48_v14  ;;  %197 = vmatpush.bf16.msra.mxu0 %v261_v34  ;;  %v257_v3 = vld [vmem:[%s449_s6 + $0x8] sm:$0xff]  ;;  %v38_v5 = vld [vmem:[%s446_s3] sm:$0xff]  ;;  %vm191_vm10 = vcmask 785408   ;;  %s318_s21 = smov 128   ;;  %s319_s4 = smov 8  }
   0xa   :  { %v55_v19 = vadd.f32 %v53_v17, %v49_v16  ;;  %v39_v6 = vld [vmem:[%s446_s3 + $0x8] sm:$0xff]  ;;  %s317_s3 = smov [#allocation3]  }
   0xb   :  { %v57_v18 = vsel %vm56_vm0, %v54_v15, 0.0  ;;  %s215_s17 = sshll.u32 %s317_s3, 4  ;;  %s216_s17 = int_to_ptr.vmem [resolvable:$true] %s215_s17 }
   0xc   :  { %58 = vadd.xlane.f32.xlu0 %v57_v18  ;;  %v60_v20 = vsel %vm56_vm0, %v55_v19, 0.0  ;;  %v280_v19 = vld [vmem:[%s450_s7] ss:$0 sm:$0xff] }
   0xd   :  { %198 = vmatpush.bf16.msra.mxu0 %v260_v36 }
  0x11   :  { %199 = vmatpush.bf16.msra.mxu0 %v259_v39 }
  0x14   :  { %61 = vadd.xlane.f32.xlu0 %v60_v20 }
  0x15   :  { %200 = vmatpush.bf16.msra.mxu0 %v258_v1 }
  0x19   :  { %201 = vmatpush.bf16.msra.mxu0 %v257_v3 }
  0x7f   :  { %v59_v22 = vpop.xlane.xlu0 %58 }
  0x80   :  { %v65_v23 = vadd.f32 %v64_v21, %v59_v22 }
  0x82   :  { %v229_v24 = vmul.f32 -1.442695, %v65_v23 }
  0x84   :  { %281 = vpow2.f32 %v229_v24 }
  0x87   :  { %v62_v25 = vpop.xlane.xlu0 %61 }
  0x88   :  { %v66_v26 = vadd.f32 %v64_v21, %v62_v25 }
  0x8a   :  { %v282_v27 = vpop.eup %281  ;;  %v230_v28 = vmul.f32 -1.442695, %v66_v26 }
  0x8b   :  { %v73_v29 = vadd.f32 1.0, %v282_v27 }
  0x8c   :  { %283 = vpow2.f32 %v230_v28 }
  0x8d   :  { %285 = vrcp.f32 %v73_v29  ;;  %v86_v41 = vand.u32 2147483648, %v73_v29  ;;  %vm80_vm2 = vweird.f32 %v73_v29  ;;  %v84_v43 = vand.u32 2147483647, %v73_v29 }
  0x8f   :  { %v87_v46 = vor.u32 1.1754944e-38, %v86_v41  ;;  %vm85_vm4 = vcmp.eq.f32.partialorder %v84_v43, 8.507059e+37 }
  0x92   :  { %v284_v30 = vpop.eup %283 }
  0x93   :  { %v286_v31 = vpop.eup %285  ;;  %v74_v32 = vadd.f32 1.0, %v284_v30 }
  0x94   :  { %v76_v33 = vmul.f32 %v286_v31, %v73_v29  ;;  %vm81_vm1 = vweird.f32 %v286_v31 }
  0x95   :  { %287 = vrcp.f32 %v74_v32  ;;  %vm82_vm3 = vmor %vm80_vm2, %vm81_vm1  ;;  %v101_v47 = vand.u32 2147483648, %v74_v32  ;;  %v99_v49 = vand.u32 2147483647, %v74_v32  ;;  %vm95_vm6 = vweird.f32 %v74_v32 }
  0x96   :  { %v77_v35 = vsub.f32 1.0, %v76_v33 }
  0x97   :  { %v102_v54 = vor.u32 1.1754944e-38, %v101_v47  ;;  %vm100_vm8 = vcmp.eq.f32.partialorder %v99_v49, 8.507059e+37 }
  0x98   :  { %v78_v37 = vmul.f32 %v286_v31, %v77_v35 }
  0x9a   :  { %v79_v38 = vadd.f32 %v286_v31, %v78_v37 }
  0x9b   :  { %v288_v40 = vpop.eup %287 }
  0x9c   :  { %v91_v42 = vmul.f32 %v288_v40, %v74_v32  ;;  %v83_v45 = vsel %vm82_vm3, %v286_v31, %v79_v38  ;;  %vm96_vm5 = vweird.f32 %v288_v40 }
  0x9d   :  { %v88_v50 = vsel %vm85_vm4, %v87_v46, %v83_v45  ;;  %vm97_vm7 = vmor %vm95_vm6, %vm96_vm5 }
  0x9e   :  { %v92_v44 = vsub.f32 1.0, %v91_v42  ;;  %v105_v56 = vsub.f32 1.0, %v88_v50  ;;  %v113_v59 = vmul.f32 %v111_v51, %v88_v50 }
  0xa0   :  { %v93_v48 = vmul.f32 %v288_v40, %v92_v44  ;;  %v109_v61 = vmul.f32 %v105_v56, %v368_v0  ;;  %v256_v0 = vld [vmem:[%s449_s6] sm:$0xff]  ;;  %v107_v9 = vmul.f32 %v105_v56, %v38_v5  ;;  %v153_v20 = vmul.f32 %v280_v19, %v105_v56 }
  0xa1   :  { %202 = vmatpush.bf16.msra.mxu0 %v256_v0 }
  0xa2   :  { %v94_v53 = vadd.f32 %v288_v40, %v93_v48 }
  0xa4   :  { %v98_v55 = vsel %vm97_vm7, %v288_v40, %v94_v53 }
  0xa5   :  { %v103_v57 = vsel %vm100_vm8, %v102_v54, %v98_v55 }
  0xa6   :  { %v106_v58 = vsub.f32 1.0, %v103_v57  ;;  %v114_v60 = vmul.f32 %v112_v52, %v103_v57 }
  0xa8   :  { %v110_v62 = vmul.f32 %v106_v58, %v390_v7  ;;  %v272_v63 = vpack.i.bf16 %v114_v60, %v113_v59  ;;  %v108_v10 = vmul.f32 %v106_v58, %v39_v6  ;;  %v154_v23 = vmul.f32 %v280_v19, %v106_v58 }
  0xaa   :  { %v267_v2 = vpack.i.bf16 %v110_v62, %v109_v61 }
  0xac   :  { %268 = vrot.lane.b32.xlu1 %v267_v2, %s315_s26 }
  0xb4   :  { %273 = vrot.lane.b32.xlu1 %v272_v63, %s316_s27 }
 0x11e   :  { %v269_v4 = vpop.permute.xlu1 %268 }
 0x11f   :  { %v271_v7 = vunpack.i.h.bf16 %v269_v4  ;;  %v270_v8 = vunpack.i.l.bf16 %v269_v4 }
 0x121   :  { %v131_v14 = vsel %vm56_vm0, %v107_v9, %v270_v8  ;;  %v132_v15 = vsel %vm56_vm0, %v108_v10, %v271_v7 }
 0x126   :  { %v274_v11 = vpop.permute.xlu1 %273 }
 0x127   :  { %v276_v12 = vunpack.i.h.bf16 %v274_v11  ;;  %v275_v13 = vunpack.i.l.bf16 %v274_v11 }
 0x129   :  { %v134_v16 = vsel %vm133_vm9, %v131_v14, %v275_v13  ;;  %v135_v17 = vsel %vm133_vm9, %v132_v15, %v276_v12 }
 0x12a   :  { %v136_v18 = vpack.c.bf16 %v135_v17, %v134_v16 }
 0x12c   :  { %255 = vmatmul.msk.bf16.vlgmr.msra.gmra.mxu0 %vm191_vm10, %v136_v18 }
 0x1a9   :  { %v204_v21 = vpop.f32.mrf.mxu0 }
 0x1aa   :  { %v205_v22 = vadd.f32 %v204_v21, %v153_v20 }
 0x1ac   :  { %209 = vst [vmem:[#allocation3] sm:$0xff] %v205_v22 }
 0x1b1   :  { %v206_v24 = vpop.f32.mrf.mxu0 }
 0x1b2   :  { %v207_v25 = vadd.f32 %v206_v24, %v154_v23 }
 0x1b4   :  { %210 = vst [vmem:[#allocation3 + $0x8] sm:$0xff] %v207_v25 }
 0x1b5   :  { %223 = dma.vmem_to_hbm [thread:$0]  %s216_s17, 256, %s218_s20, [#allocation4], %s318_s21, %s318_s21, %s319_s4  }
 0x1b6   :  { %313 = dma.done.wait [#allocation4], 256  }
 0x1b7   :  { %314 = vsyncadd [#allocation4], 4294967040 }
 0x1b8   :  { %228 = vsyncpa [#allocation4], 1 }

</bundles_post_ra>
